<compile_context>
chip_gen: v7x
topology: tpu7x:2x2x1
jax: 0.10.0
libtpu: 0.0.40
codegen_flags: <defaults>
</compile_context>

<pallas_src>
import functools

import jax
import jax.numpy as jnp
from jax import lax
from jax.experimental import pallas as pl
from jax.experimental.pallas import tpu as pltpu


def _round_up(x, m):
    return ((x + m - 1) // m) * m


# ----------------------------- Pallas kernels ---------------------------------
def _kernel_wt_is_kn(x_ref, w_ref, o_ref):
    """do_transpose=False: W stored (K, N).  yT_tile += xT_tile @ W_tile."""
    @pl.when(pl.program_id(2) == 0)
    def _():
        o_ref[...] = jnp.zeros_like(o_ref)

    o_ref[...] += jnp.dot(
        x_ref[...], w_ref[...], preferred_element_type=jnp.float32
    )


def _kernel_wt_is_nk(x_ref, w_ref, o_ref):
    """do_transpose=True: W stored (N, K).  yT_tile += xT_tile @ W_tile.T
    (contraction on the last dim of both operands — native MXU pattern, no
    materialized transpose)."""
    @pl.when(pl.program_id(2) == 0)
    def _():
        o_ref[...] = jnp.zeros_like(o_ref)

    o_ref[...] += lax.dot_general(
        x_ref[...],
        w_ref[...],
        dimension_numbers=(((1,), (1,)), ((), ())),
        preferred_element_type=jnp.float32,
    )


# ----------------------------- pallas_call wrapper -----------------------------
@functools.partial(
    jax.jit, static_argnames=("do_transpose", "tb", "tn", "tk", "compute_dtype")
)
def _pallas_linear_nb(xT, w, *, do_transpose, tb=128, tn=512, tk=512,
                      compute_dtype=jnp.float32):
    """yT = xT @ W_eff.T.  xT: (B, K);  W: (N, K) if do_transpose else (K, N).
    Returns (B, N) float32, with N (out_dim) lane-dense."""
    B, K = xT.shape
    if do_transpose:
        N, Kw = w.shape
    else:
        Kw, N = w.shape
    assert K == Kw, f"inner dims mismatch: {K} vs {Kw}"

    # Sublane alignment depends on dtype packing (bf16 packs 16 rows / vreg).
    sub = 16 if compute_dtype == jnp.bfloat16 else 8

    # Clamp preferred tiles to the (aligned) dims — no full-dim runaway blocks.
    tb = min(tb, _round_up(B, sub))
    tn = min(tn, _round_up(N, 128))
    tk = min(tk, _round_up(K, 128))

    Bp, Np, Kp = _round_up(B, tb), _round_up(N, tn), _round_up(K, tk)

    xT_p = xT if (Bp, Kp) == (B, K) else jnp.pad(xT, ((0, Bp - B), (0, Kp - K)))
    if do_transpose:
        w_p = w if (Np, Kp) == (N, K) else jnp.pad(w, ((0, Np - N), (0, Kp - K)))
        w_spec = pl.BlockSpec((tn, tk), lambda i, j, k: (j, k))
        kernel = _kernel_wt_is_nk
    else:
        w_p = w if (Kp, Np) == (K, N) else jnp.pad(w, ((0, Kp - K), (0, Np - N)))
        w_spec = pl.BlockSpec((tk, tn), lambda i, j, k: (k, j))
        kernel = _kernel_wt_is_kn

    if xT_p.dtype != compute_dtype:
        xT_p = xT_p.astype(compute_dtype)
    if w_p.dtype != compute_dtype:
        w_p = w_p.astype(compute_dtype)

    grid = (Bp // tb, Np // tn, Kp // tk)  # K (reduction) innermost

    in_bytes = jnp.dtype(compute_dtype).itemsize
    cost = pl.CostEstimate(
        flops=2 * Bp * Np * Kp,
        transcendentals=0,
        bytes_accessed=in_bytes * (Bp * Kp + Kp * Np) + 4 * Bp * Np,
    )

    yT_p = pl.pallas_call(
        kernel,
        out_shape=jax.ShapeDtypeStruct((Bp, Np), jnp.float32),
        grid_spec=pltpu.PrefetchScalarGridSpec(
            num_scalar_prefetch=0,
            grid=grid,
            in_specs=[
                pl.BlockSpec((tb, tk), lambda i, j, k: (i, k)),
                w_spec,
            ],
            # Block index constant along K -> output tile stays resident in VMEM
            # across the reduction; accumulate directly into it (no scratch).
            out_specs=pl.BlockSpec((tb, tn), lambda i, j, k: (i, j)),
        ),
        compiler_params=pltpu.CompilerParams(
            dimension_semantics=("parallel", "parallel", "arbitrary"),
        ),
        cost_estimate=cost,
    )(xT_p, w_p)

    return yT_p[:B, :N]


# ----------------------------- LinearNB wrapper -------------------------------
def init_linear_nb_params(key, in_dim, out_dim, do_transpose):
    """Deterministic init matching nn.Linear's shape conventions (no bias)."""
    if do_transpose:
        shape = (out_dim, in_dim)   # nn.Linear(in_dim, out_dim).weight
        fan_in = in_dim
    else:
        shape = (in_dim, out_dim)   # nn.Linear(out_dim, in_dim).weight
        fan_in = out_dim
    bound = 1.0 / jnp.sqrt(jnp.float32(fan_in))
    return jax.random.uniform(key, shape, jnp.float32, minval=-bound, maxval=bound)


def linear_nb_forward(x, weight, do_transpose, compute_dtype=jnp.float32,
                      use_pallas=None):
    """Forward pass of LinearNB.  x: (in_dim, batch) -> y: (out_dim, batch)."""
    if x.ndim > 2:
        # TODO(synk): upstream output-side reshape is unreachable/buggy (self.output);
        # only the input-side flatten is reproduced.
        x = x.reshape(x.shape[0], -1)
    in_dim, batch = x.shape
    out_dim = weight.shape[0] if do_transpose else weight.shape[1]

    if use_pallas is None:
        # Tiny memn2n-sized problems (~64x32x8) are pure launch/DMA overhead in a
        # custom kernel and block XLA fusion with neighbors -> use stock XLA there.
        use_pallas = (2 * batch * out_dim * in_dim) >= (1 << 22)

    if not use_pallas:
        w_eff = weight if do_transpose else weight.T
        return jnp.matmul(w_eff, x)

    # Lane-dense layout: kernel computes yT (batch, out_dim); W never transposed.
    xT = jnp.swapaxes(x, 0, 1)                      # (batch, in_dim) — tiny vs W
    yT = _pallas_linear_nb(xT, weight, do_transpose=do_transpose,
                           compute_dtype=compute_dtype)
    return jnp.swapaxes(yT, 0, 1)                   # (out_dim, batch)


# ----------------------------------- main -------------------------------------
if __name__ == "__main__":
    key = jax.random.PRNGKey(0)
    k_w1, k_w2, k_x = jax.random.split(key, 3)

    in_dim, out_dim, batch = 128, 256, 8

    # memn2n convention: x is feature-major (in_dim, batch).
    x = jax.random.normal(k_x, (in_dim, batch), jnp.float32)

    # Case 1: do_transpose=True  -> weight (out_dim, in_dim), y = W @ x
    w_t = init_linear_nb_params(k_w1, in_dim, out_dim, do_transpose=True)
    # Case 2: do_transpose=False -> weight (in_dim, out_dim), y = W.T @ x
    w_nt = init_linear_nb_params(k_w2, in_dim, out_dim, do_transpose=False)

    # f32 path (strict check) — force the Pallas kernel for the test.
    y_t = linear_nb_forward(x, w_t, do_transpose=True, use_pallas=True)
    y_nt = linear_nb_forward(x, w_nt, do_transpose=False, use_pallas=True)

    # bf16-input / f32-accumulate fast path (looser tolerance).
    y_t_bf = linear_nb_forward(x, w_t, do_transpose=True,
                               compute_dtype=jnp.bfloat16, use_pallas=True)
    y_nt_bf = linear_nb_forward(x, w_nt, do_transpose=False,
                                compute_dtype=jnp.bfloat16, use_pallas=True)

    jax.block_until_ready((y_t, y_nt, y_t_bf, y_nt_bf))

    # Reference check against plain JAX.
    ref_t = jnp.matmul(w_t, x)
    ref_nt = jnp.matmul(w_nt.T, x)
    assert y_t.shape == (out_dim, batch)
    assert y_nt.shape == (out_dim, batch)
    assert jnp.allclose(y_t, ref_t, atol=1e-4, rtol=1e-4)
    assert jnp.allclose(y_nt, ref_nt, atol=1e-4, rtol=1e-4)
    assert jnp.allclose(y_t_bf, ref_t, atol=5e-2, rtol=5e-2)
    assert jnp.allclose(y_nt_bf, ref_nt, atol=5e-2, rtol=5e-2)

    print("KERNEL_OK")
</pallas_src>

<mosaic_0001>
module attributes {stable_mosaic.version = 11 : i64} {
  func.func @_kernel_wt_is_nk(%arg0: i32, %arg1: i32, %arg2: i32, %arg3: memref<8x128xf32, #tpu.memory_space<vmem>>, %arg4: memref<256x128xf32, #tpu.memory_space<vmem>>, %arg5: memref<8x256xf32, #tpu.memory_space<vmem>>) attributes {dimension_semantics = [#tpu.dimension_semantics<parallel>, #tpu.dimension_semantics<parallel>, #tpu.dimension_semantics<arbitrary>], iteration_bounds = array<i64: 1, 1, 1>, scalar_prefetch = 0 : i64, scratch_operands = 0 : i64, tpu.core_type = #tpu.core_type<tc>, window_params = [{transform_indices = @transform_0, window_bounds = array<i64: 8, 128>}, {transform_indices = @transform_1, window_bounds = array<i64: 256, 128>}, {transform_indices = @transform_2, window_bounds = array<i64: 8, 256>}]} {
    %c0_i32 = arith.constant 0 : i32
    %0 = arith.cmpi eq, %arg2, %c0_i32 : i32
    %1 = arith.extui %0 : i1 to i32
    %c0_i32_0 = arith.constant 0 : i32
    %2 = arith.cmpi ne, %1, %c0_i32_0 : i32
    scf.if %2 {
      %cst_8 = arith.constant 0.000000e+00 : f32
      %9 = vector.broadcast %cst_8 : f32 to vector<8x256xf32>
      %c0_9 = arith.constant 0 : index
      %c0_10 = arith.constant 0 : index
      %10 = vector.load %arg5[%c0_9, %c0_10] : memref<8x256xf32, #tpu.memory_space<vmem>>, vector<8x256xf32>
      tpu.vector_store %arg5[%c0_9, %c0_10], %9 {strides = array<i32>} : memref<8x256xf32, #tpu.memory_space<vmem>>, vector<8x256xf32>,
    } else {
    }
    %c0 = arith.constant 0 : index
    %c0_1 = arith.constant 0 : index
    %3 = vector.load %arg5[%c0, %c0_1] : memref<8x256xf32, #tpu.memory_space<vmem>>, vector<8x256xf32>
    %c0_2 = arith.constant 0 : index
    %c0_3 = arith.constant 0 : index
    %4 = vector.load %arg3[%c0_2, %c0_3] : memref<8x128xf32, #tpu.memory_space<vmem>>, vector<8x128xf32>
    %c0_4 = arith.constant 0 : index
    %c0_5 = arith.constant 0 : index
    %5 = vector.load %arg4[%c0_4, %c0_5] : memref<256x128xf32, #tpu.memory_space<vmem>>, vector<256x128xf32>
    %cst = arith.constant dense<0.000000e+00> : vector<8x256xf32>
    %6 = tpu.matmul %4, %5, %cst {dimension_numbers = #tpu.dot_dimension_numbers<[1], [1], [0], [0], [0, 0, 1, 0], [], []>} : vector<8x128xf32>, vector<256x128xf32>, vector<8x256xf32> -> vector<8x256xf32>
    %7 = arith.addf %3, %6 : vector<8x256xf32>
    %c0_6 = arith.constant 0 : index
    %c0_7 = arith.constant 0 : index
    %8 = vector.load %arg5[%c0_6, %c0_7] : memref<8x256xf32, #tpu.memory_space<vmem>>, vector<8x256xf32>
    tpu.vector_store %arg5[%c0_6, %c0_7], %7 {strides = array<i32>} : memref<8x256xf32, #tpu.memory_space<vmem>>, vector<8x256xf32>,
    return
  }
  func.func @transform_0(%arg0: i32, %arg1: i32, %arg2: i32) -> (i32, i32) {
    %c0_i32 = arith.constant 0 : i32
    return %arg0, %arg2 : i32, i32
  }
  func.func @transform_1(%arg0: i32, %arg1: i32, %arg2: i32) -> (i32, i32) {
    %c0_i32 = arith.constant 0 : i32
    return %arg1, %arg2 : i32, i32
  }
  func.func @transform_2(%arg0: i32, %arg1: i32, %arg2: i32) -> (i32, i32) {
    %c0_i32 = arith.constant 0 : i32
    return %arg0, %arg1 : i32, i32
  }
}

</mosaic_0001>

<bundles_post_ra>
// kernel: _pallas_linear_nb.1
= control target key start
LH: loop header
LB: loop body
LE: loop exit
PB: predicated region body
PF: predicated region fallthrough
CT: control target
= control target key end

     0   :  { %7 = vsyncpa [#allocation3], 0  ;;  %s377_s0 = inlined_call_operand.hbm [shape: f32[8,128], index: 0, kind: input, shape index: {}]   ;;  %s378_s1 = inlined_call_operand.hbm [shape: f32[256,128], index: 1, kind: input, shape index: {}]   ;;  %s379_s2 = inlined_call_operand.hbm [shape: f32[8,256], index: 2, kind: output, shape index: {}]  }
   0x1   :  { %8 = vsyncpa [#allocation6], 0 }
   0x2   :  { %9 = vsyncpa [#allocation4], 0  ;;  %s314_s9 = smov [#allocation2]   ;;  %s315_s11 = smov [#allocation5]  }
   0x3   :  { %s16_s10 = sshll.u32 %s314_s9, 4  ;;  %s25_s12 = sshll.u32 %s315_s11, 4  ;;  %s17_s10 = int_to_ptr.vmem [resolvable:$true] %s16_s10  ;;  %s334_s12 = int_to_ptr.vmem [resolvable:$true] %s25_s12 }
   0x4   :  { %s242_s15 = scalar_lea.hbm %s377_s0, 128 }
   0x5   :  { %p243_p0 = scmp.ne.s32.totalorder %s377_s0, %s242_s15  ;;  %p246_p1 = scmp.lt.u32.totalorder %s242_s15, %s377_s0 }
   0x7   :  { %p248_p2 = pnand %p246_p1, %p243_p0 }
   0x9   :  { %251 = shalt.err (!%p248_p2)
}
   0xa   :  { %s252_s20 = scalar_lea.vmem %s17_s10, 128  ;;  %p257_p4 = scmp.lt.s32.totalorder %s17_s10, %s17_s10 }
   0xb   :  { %p253_p3 = scmp.ne.s32.totalorder %s17_s10, %s252_s20  ;;  %p258_p5 = scmp.lt.s32.totalorder %s252_s20, %s252_s20 }
   0xd   :  { %p259_p6 = por %p258_p5, %p257_p4 }
   0xf   :  { %p260_p7 = pnand %p259_p6, %p253_p3 }
  0x11   :  { %263 = shalt.err (!%p260_p7)
}
  0x12   :  { %19 = dma.hbm_to_vmem [thread:$0]  %s377_s0, 128, %s17_s10, [#allocation3]  }
  0x13   :  { %s264_s25 = scalar_lea.hbm %s378_s1, 4096 }
  0x14   :  { %p265_p8 = scmp.ne.s32.totalorder %s378_s1, %s264_s25  ;;  %p268_p9 = scmp.lt.u32.totalorder %s264_s25, %s378_s1 }
  0x16   :  { %p270_p10 = pnand %p268_p9, %p265_p8 }
  0x18   :  { %273 = shalt.err (!%p270_p10)
}
  0x19   :  { %s274_s30 = scalar_lea.vmem %s334_s12, 4096  ;;  %p279_p12 = scmp.lt.s32.totalorder %s334_s12, %s334_s12 }
  0x1a   :  { %p275_p11 = scmp.ne.s32.totalorder %s334_s12, %s274_s30  ;;  %p280_p13 = scmp.lt.s32.totalorder %s274_s30, %s274_s30 }
  0x1c   :  { %p281_p0 = por %p280_p13, %p279_p12 }
  0x1e   :  { %p282_p1 = pnand %p281_p0, %p275_p11 }
  0x20   :  { %285 = shalt.err (!%p282_p1)
}
  0x21   :  { %s316_s0 = smov 128   ;;  %s317_s3 = smov 8  }
  0x22   :  { %31 = dma.hbm_to_vmem [thread:$0]  %s378_s1, 4096, %s334_s12, [#allocation6], %s316_s0, %s316_s0, %s317_s3  }
  0x23   :  { %308 = dma.done.wait [#allocation3], 128  }
  0x24   :  { %309 = vsyncadd [#allocation3], 4294967168 }
  0x25   :  { %310 = dma.done.wait [#allocation6], 4096  }
  0x26   :  { %311 = vsyncadd [#allocation6], 4294963200  ;;  %v63_v0 = vld [vmem:[#allocation5 + $0x80] sm:$0xff]  ;;  %v64_v1 = vld [vmem:[#allocation5 + $0x88] sm:$0xff]  ;;  %s318_s1 = smov [#allocation7]  }
  0x27   :  { %v47_v2 = vld [vmem:[#allocation5] sm:$0xff]  ;;  %v204_v3 = vpack.c.bf16 %v64_v1, %v63_v0  ;;  %v48_v4 = vld [vmem:[#allocation5 + $0x8] sm:$0xff]  ;;  %v65_v5 = vld [vmem:[#allocation5 + $0x90] sm:$0xff]  ;;  %s160_s6 = sshll.u32 %s318_s1, 4  ;;  %s161_s6 = int_to_ptr.vmem [resolvable:$true] %s160_s6 }
  0x28   :  { %v66_v6 = vld [vmem:[#allocation5 + $0x98] sm:$0xff]  ;;  %v206_v7 = vpack.c.bf16 %v48_v4, %v47_v2  ;;  %v49_v9 = vld [vmem:[#allocation5 + $0x10] sm:$0xff]  ;;  %v67_v11 = vld [vmem:[#allocation5 + $0xa0] sm:$0xff]  ;;  %s286_s7 = scalar_lea.vmem %s161_s6, 256  ;;  %p291_p3 = scmp.lt.s32.totalorder %s161_s6, %s161_s6 }
  0x29   :  { %v208_v8 = vpack.c.bf16 %v66_v6, %v65_v5  ;;  %205 = vmatprep.subr.bf16.mxu0 %v204_v3  ;;  %v50_v10 = vld [vmem:[#allocation5 + $0x18] sm:$0xff]  ;;  %v68_v12 = vld [vmem:[#allocation5 + $0xa8] sm:$0xff]  ;;  %v51_v16 = vld [vmem:[#allocation5 + $0x20] sm:$0xff]  ;;  %p287_p2 = scmp.ne.s32.totalorder %s161_s6, %s286_s7  ;;  %p292_p4 = scmp.lt.s32.totalorder %s286_s7, %s286_s7 }
  0x2a   :  { %207 = vmatpush3.bf16.xpose.msra.mxu0 %v206_v7  ;;  %v210_v13 = vpack.c.bf16 %v50_v10, %v49_v9  ;;  %v212_v14 = vpack.c.bf16 %v68_v12, %v67_v11  ;;  %v46_v15 = vld [vmem:[#allocation2] sm:$0xff]  ;;  %v52_v17 = vld [vmem:[#allocation5 + $0x28] sm:$0xff]  ;;  %v69_v18 = vld [vmem:[#allocation5 + $0xb0] sm:$0xff] }
  0x2b   :  { %209 = vmatprep.subr.bf16.mxu0 %v208_v8  ;;  %202 = vmatprep.mubr.f32.mxu0 %v46_v15  ;;  %v70_v19 = vld [vmem:[#allocation5 + $0xb8] sm:$0xff]  ;;  %v214_v20 = vpack.c.bf16 %v52_v17, %v51_v16  ;;  %v53_v22 = vld [vmem:[#allocation5 + $0x30] sm:$0xff]  ;;  %v71_v24 = vld [vmem:[#allocation5 + $0xc0] sm:$0xff]  ;;  %p293_p5 = por %p292_p4, %p291_p3 }
  0x2c   :  { %v216_v21 = vpack.c.bf16 %v70_v19, %v69_v18  ;;  %v54_v23 = vld [vmem:[#allocation5 + $0x38] sm:$0xff]  ;;  %v72_v25 = vld [vmem:[#allocation5 + $0xc8] sm:$0xff]  ;;  %v55_v28 = vld [vmem:[#allocation5 + $0x40] sm:$0xff] }
  0x2d   :  { %v218_v26 = vpack.c.bf16 %v54_v23, %v53_v22  ;;  %v220_v27 = vpack.c.bf16 %v72_v25, %v71_v24  ;;  %v56_v29 = vld [vmem:[#allocation5 + $0x48] sm:$0xff]  ;;  %v73_v30 = vld [vmem:[#allocation5 + $0xd0] sm:$0xff]  ;;  %v74_v31 = vld [vmem:[#allocation5 + $0xd8] sm:$0xff]  ;;  %p294_p6 = pnand %p293_p5, %p287_p2 }
  0x2e   :  { %v222_v32 = vpack.c.bf16 %v56_v29, %v55_v28  ;;  %v224_v33 = vpack.c.bf16 %v74_v31, %v73_v30  ;;  %v57_v34 = vld [vmem:[#allocation5 + $0x50] sm:$0xff]  ;;  %v58_v35 = vld [vmem:[#allocation5 + $0x58] sm:$0xff]  ;;  %v75_v36 = vld [vmem:[#allocation5 + $0xe0] sm:$0xff] }
  0x2f   :  { %v76_v37 = vld [vmem:[#allocation5 + $0xe8] sm:$0xff]  ;;  %v226_v38 = vpack.c.bf16 %v58_v35, %v57_v34  ;;  %v59_v40 = vld [vmem:[#allocation5 + $0x60] sm:$0xff]  ;;  %v77_v42 = vld [vmem:[#allocation5 + $0xf0] sm:$0xff] }
  0x30   :  { %v228_v39 = vpack.c.bf16 %v76_v37, %v75_v36  ;;  %v60_v41 = vld [vmem:[#allocation5 + $0x68] sm:$0xff]  ;;  %v78_v43 = vld [vmem:[#allocation5 + $0xf8] sm:$0xff]  ;;  %v61_v46 = vld [vmem:[#allocation5 + $0x70] sm:$0xff] }
  0x31   :  { %v230_v44 = vpack.c.bf16 %v60_v41, %v59_v40  ;;  %v232_v45 = vpack.c.bf16 %v78_v43, %v77_v42  ;;  %v62_v47 = vld [vmem:[#allocation5 + $0x78] sm:$0xff] }
  0x32   :  { %211 = vmatpush3.bf16.xpose.msra.mxu0 %v210_v13  ;;  %v234_v48 = vpack.c.bf16 %v62_v47, %v61_v46 }
  0x33   :  { %213 = vmatprep.subr.bf16.mxu0 %v212_v14 }
  0x3a   :  { %215 = vmatpush3.bf16.xpose.msra.mxu0 %v214_v20 }
  0x3b   :  { %217 = vmatprep.subr.bf16.mxu0 %v216_v21 }
  0x42   :  { %219 = vmatpush3.bf16.xpose.msra.mxu0 %v218_v26 }
  0x43   :  { %221 = vmatprep.subr.bf16.mxu0 %v220_v27 }
  0x4a   :  { %223 = vmatpush3.bf16.xpose.msra.mxu0 %v222_v32 }
  0x4b   :  { %225 = vmatprep.subr.bf16.mxu0 %v224_v33 }
  0x52   :  { %227 = vmatpush3.bf16.xpose.msra.mxu0 %v226_v38 }
  0x53   :  { %229 = vmatprep.subr.bf16.mxu0 %v228_v39 }
  0x5a   :  { %231 = vmatpush3.bf16.xpose.msra.mxu0 %v230_v44 }
  0x5b   :  { %233 = vmatprep.subr.bf16.mxu0 %v232_v45 }
  0x62   :  { %235 = vmatpush3.bf16.xpose.msra.mxu0 %v234_v48 }
  0x69   :  { %203 = vmatmul.mubr.f32.vlgmr.msra.gmra.mrb[0].mxu0 %v46_v15 }
 0x13c   :  { %v145_v49 = vpop.f32.mrb[0].mxu0 }
 0x13d   :  { %v147_v50 = vpop.f32.mrb[1].mxu0  ;;  %152 = vst [vmem:[#allocation7] sm:$0xff] %v145_v49 }
 0x13e   :  { %153 = vst [vmem:[#allocation7 + $0x8] sm:$0xff] %v147_v50 }
 0x13f   :  { %297 = shalt.err (!%p294_p6)
}
 0x140   :  { %s298_s10 = scalar_lea.hbm %s379_s2, 256 }
 0x141   :  { %p299_p7 = scmp.ne.s32.totalorder %s379_s2, %s298_s10  ;;  %p302_p8 = scmp.lt.u32.totalorder %s298_s10, %s379_s2 }
 0x143   :  { %p304_p9 = pnand %p302_p8, %p299_p7 }
 0x145   :  { %307 = shalt.err (!%p304_p9)
}
 0x146   :  { %163 = dma.vmem_to_hbm [thread:$0]  %s161_s6, 256, %s379_s2, [#allocation4]  }
 0x147   :  { %312 = dma.done.wait [#allocation4], 256  }
 0x148   :  { %313 = vsyncadd [#allocation4], 4294967040 }
 0x149   :  { %167 = vsyncpa [#allocation3], 1 }
 0x14a   :  { %168 = vsyncpa [#allocation6], 1 }
 0x14b   :  { %169 = vsyncpa [#allocation4], 1 }

</bundles_post_ra>
